<compile_context>
chip_gen: v5e
topology: v5e:2x2
jax: 0.10.0
libtpu: 0.0.40
codegen_flags: <defaults>
</compile_context>

<pallas_src>
import functools
import math

import jax
import jax.numpy as jnp
from jax import lax
from jax.experimental import pallas as pl
from jax.experimental.pallas import tpu as pltpu


def _round_up(x, m):
    return ((x + m - 1) // m) * m


def _divisors_desc(n):
    return [d for d in range(n, 0, -1) if n % d == 0]


def _mhsa_kernel(x_ref, w_ref, b_ref, m_ref, o_ref, k_heads, *, gs, dh, tq):
    """One (batch, head_group, query_tile) grid point.

    x_ref  : (1, S_pad, H)       hidden states for batch b (resident across hg, qt)
    w_ref  : (H, gs*dh)          key-weight columns of this head group (pre-scaled)
    b_ref  : (1, gs*dh) f32      key-bias slice of this head group (pre-scaled)
    m_ref  : (1, 1, 1, S_pad)    additive attention mask for batch b
    o_ref  : (1, gs, tq, S_pad)  scores output block (this head group, one q tile)
    k_heads: (gs, S_pad, dh)     head-major K projection scratch, filled at qt==0
    """
    qt = pl.program_id(2)

    @pl.when(qt == 0)
    def _project():
        # Project this head group once per (batch, head group); store head-major
        # so the steady-state loop never column-slices a lane-unaligned scratch.
        x2d = x_ref[0]                                        # (S_pad, H)
        for hh in range(gs):                                  # static unroll
            c0 = hh * dh
            proj = jnp.dot(x2d, w_ref[:, c0:c0 + dh],
                           preferred_element_type=jnp.float32)  # (S_pad, dh) f32
            proj = proj + b_ref[:, c0:c0 + dh]                  # bias add in f32
            k_heads[hh] = proj.astype(k_heads.dtype)

    mask = m_ref[0, 0]                                        # (1, S_pad) f32
    row0 = pl.multiple_of(qt * tq, tq)

    for hh in range(gs):                                      # static unroll
        kh = k_heads.at[hh]                                   # Ref view (S_pad, dh)
        k_h = kh[...]                                         # (S_pad, dh)
        # Q == K (the module's forward uses self.key for both); the 1/sqrt(dh)
        # scale is already folded into W and b as dh**-0.25 on each side.
        q_h = kh[pl.ds(row0, tq), :]                          # (tq, dh)
        # Contract the head dim directly -- no explicit k.T / XLU transpose.
        s_h = lax.dot_general(
            q_h, k_h,
            dimension_numbers=(((1,), (1,)), ((), ())),
            preferred_element_type=jnp.float32)               # (tq, S_pad) f32
        o_ref[0, hh] = (s_h + mask).astype(o_ref.dtype)


def _estimate_vmem_bytes(s_pad, hidden, gs, dh, tq, cb, ob):
    """Conservative per-step VMEM footprint (double buffers + lane padding)."""
    x_blk = 2 * s_pad * hidden * cb                    # x block (double-buffered)
    w_blk = 2 * hidden * gs * dh * cb                  # weight columns of the group
    b_blk = 2 * _round_up(gs * dh, 128) * 4            # f32 bias slice
    m_blk = 2 * _round_up(s_pad, 128) * 4              # f32 mask row
    o_blk = 2 * gs * tq * s_pad * ob                   # output block (double-buffered)
    scr = gs * s_pad * _round_up(dh, 128) * cb         # head-major K scratch
    return x_blk + w_blk + b_blk + m_blk + o_blk + scr + (2 << 20)


def _choose_tiling(batch, s_pad, hidden, n_heads, dh, cb, ob, budget, tq_target):
    """Pick (tq, head_group_size): keep tq large, shrink the head group first."""
    cap = max(8, (min(tq_target, s_pad) // 8) * 8)
    tq_cands = [d for d in range(cap, 7, -8) if s_pad % d == 0] or [s_pad]
    # Head-group candidates: must divide nH and keep the weight block lane
    # aligned (gs*dh % 128 == 0) unless the group covers all heads.
    gs_cands = [g for g in _divisors_desc(n_heads)
                if g == n_heads or (g * dh) % 128 == 0]
    # v7x megacore: with batch==1 prefer >=2 head groups so both TensorCores
    # get parallel work (the query-tile axis must stay 'arbitrary').
    if batch == 1 and n_heads > 1:
        proper = [g for g in gs_cands if g < n_heads]
        if proper:
            gs_cands = proper
    for tq in tq_cands:                    # largest tq first ...
        for gs in gs_cands:                # ... largest head group that fits
            if _estimate_vmem_bytes(s_pad, hidden, gs, dh, tq, cb, ob) <= budget:
                return tq, gs
    return tq_cands[-1], gs_cands[-1]


def _vmem_capacity_bytes():
    cap = 64 * 1024 * 1024                 # conservative fallback (v7x-sized)
    try:
        info = pltpu.get_tpu_info()
        cap = int(getattr(info, "vmem_capacity_bytes", cap))
    except Exception:
        pass
    return cap


def multi_head_self_attention_scores(hidden_states, attention_mask,
                                     w_key, b_key, num_attention_heads, *,
                                     out_dtype=jnp.bfloat16,
                                     compute_dtype=jnp.bfloat16,
                                     trim_padding=True,
                                     tq_target=512,
                                     vmem_headroom_bytes=8 << 20):
    """(K @ K^T) / sqrt(dh) + mask, per the module's forward (Q := K projection).

    Returns [B, nH, S, S] when trim_padding=True (exact module semantics).
    With trim_padding=False the padded [B, nH, S_pad, S_pad] scores are returned
    directly (padded key columns carry a -1e9 additive mask so a downstream
    softmax ignores them; padded query rows are garbage and should be ignored),
    which avoids an extra full HBM read+write of the dominant tensor.
    """
    B, S, H = hidden_states.shape
    nH = num_attention_heads
    assert H % nH == 0
    dh = H // nH
    assert attention_mask.shape == (B, 1, 1, S), attention_mask.shape

    # Fold the 1/sqrt(dh) score scale into the shared Q=K projection: scale W
    # and b by dh**-0.25 (Q.K^T then carries dh**-0.5).
    c = float(dh) ** -0.25
    w_t = (w_key.T * c).astype(compute_dtype)      # (H_in, H_out), pre-transposed
    b = (b_key * c).reshape(1, H).astype(jnp.float32)

    # Pad the sequence axis: to a sublane multiple (8) when small, to a lane
    # multiple (128) when S is large enough that lane-dense stores pay off.
    if S > 128 and S % 128 != 0:
        s_pad = _round_up(S, 128)
    else:
        s_pad = _round_up(S, 8)

    x = hidden_states.astype(compute_dtype)
    mask = attention_mask.astype(jnp.float32)
    if s_pad != S:
        x = jnp.pad(x, ((0, 0), (0, s_pad - S), (0, 0)))
        # Padded key columns get a hard negative additive mask so that the
        # padded scores are safe to consume directly (trim_padding=False).
        mask = jnp.pad(mask, ((0, 0), (0, 0), (0, 0), (0, s_pad - S)),
                       constant_values=-1e9)

    cb = jnp.dtype(compute_dtype).itemsize
    ob = jnp.dtype(out_dtype).itemsize

    vmem_cap = _vmem_capacity_bytes()
    budget = max(16 << 20, vmem_cap - vmem_headroom_bytes)

    tq, gs = _choose_tiling(B, s_pad, H, nH, dh, cb, ob, budget, tq_target)
    n_qt = s_pad // tq
    n_hg = nH // gs

    est = _estimate_vmem_bytes(s_pad, H, gs, dh, tq, cb, ob)
    vmem_limit = int(min(budget, max(est * 1.25 + (1 << 20), 32 << 20)))

    kernel = functools.partial(_mhsa_kernel, gs=gs, dh=dh, tq=tq)

    out = pl.pallas_call(
        kernel,
        out_shape=jax.ShapeDtypeStruct((B, nH, s_pad, s_pad), out_dtype),
        grid=(B, n_hg, n_qt),
        in_specs=[
            # hidden states: same block across (hg, qt) -> DMA'd once per batch.
            pl.BlockSpec((1, s_pad, H), lambda bb, hg, qq: (bb, 0, 0)),
            # key weight / bias: only this head group's columns are resident.
            pl.BlockSpec((H, gs * dh), lambda bb, hg, qq: (0, hg)),
            pl.BlockSpec((1, gs * dh), lambda bb, hg, qq: (0, hg)),
            # additive mask per batch.
            pl.BlockSpec((1, 1, 1, s_pad), lambda bb, hg, qq: (bb, 0, 0, 0)),
        ],
        out_specs=pl.BlockSpec((1, gs, tq, s_pad),
                               lambda bb, hg, qq: (bb, hg, qq, 0)),
        scratch_shapes=[pltpu.VMEM((gs, s_pad, dh), compute_dtype)],
        compiler_params=pltpu.CompilerParams(
            dimension_semantics=("parallel", "parallel", "arbitrary"),
            vmem_limit_bytes=vmem_limit),
    )(x, w_t, b, mask)

    if trim_padding and s_pad != S:
        out = out[:, :, :S, :S]
    return out


def reference_scores(hidden_states, attention_mask, w_key, b_key, num_heads):
    """Pure-JAX f32 reference mirroring the PyTorch forward (incl. the Q=K quirk)."""
    B, S, H = hidden_states.shape
    dh = H // num_heads
    mixed_key = hidden_states @ w_key.T + b_key            # (B, S, H)
    mixed_query = mixed_key                                # forward uses self.key for Q too
    k = mixed_key.reshape(B, S, num_heads, dh).transpose(0, 2, 1, 3)
    q = mixed_query.reshape(B, S, num_heads, dh).transpose(0, 2, 1, 3)
    scores = jnp.einsum("bhqd,bhkd->bhqk", q, k) / math.sqrt(dh)
    return scores + attention_mask


def _run_case(case_key, B, S, H, NH, *, compute_dtype, out_dtype,
              trim_padding, rtol, atol):
    k_hs, k_wq, k_bq, k_wk, k_bk, k_mask = jax.random.split(case_key, 6)

    hidden_states = jax.random.normal(k_hs, (B, S, H), dtype=jnp.float32)

    # Deterministic "PyTorch-like" Linear init: U(-1/sqrt(H), 1/sqrt(H)).
    bound = 1.0 / math.sqrt(H)
    # query Linear exists in __init__ but is unused by forward (kept for parity).
    _w_query = jax.random.uniform(k_wq, (H, H), jnp.float32, -bound, bound)
    _b_query = jax.random.uniform(k_bq, (H,), jnp.float32, -bound, bound)
    w_key = jax.random.uniform(k_wk, (H, H), jnp.float32, -bound, bound)
    b_key = jax.random.uniform(k_bk, (H,), jnp.float32, -bound, bound)

    # Additive attention mask (0 / -10000 pattern), shape [B, 1, 1, S].
    mask_bits = jax.random.bernoulli(k_mask, 0.8, (B, 1, 1, S))
    attention_mask = jnp.where(mask_bits, 0.0, -10000.0).astype(jnp.float32)

    out = multi_head_self_attention_scores(
        hidden_states, attention_mask, w_key, b_key, NH,
        out_dtype=out_dtype, compute_dtype=compute_dtype,
        trim_padding=trim_padding)
    out = jax.block_until_ready(out)

    ref = reference_scores(hidden_states, attention_mask, w_key, b_key, NH)

    if trim_padding:
        assert out.shape == (B, NH, S, S), (out.shape, (B, NH, S, S))
        cmp = out.astype(jnp.float32)
    else:
        assert out.shape[0] == B and out.shape[1] == NH
        assert out.shape[2] >= S and out.shape[3] >= S, out.shape
        full = out.astype(jnp.float32)
        cmp = full[:, :, :S, :S]
        if out.shape[3] > S:
            # Padded key columns must be hard-masked (safe for a fused softmax).
            assert bool(jnp.all(full[:, :, :S, S:] < -1e8))

    assert jnp.allclose(cmp, ref, rtol=rtol, atol=atol), (
        "mismatch vs reference, max abs err = "
        f"{float(jnp.max(jnp.abs(cmp - ref)))}")


if __name__ == "__main__":
    root = jax.random.PRNGKey(0)
    k1, k2, k3 = jax.random.split(root, 3)
    # Exact-precision path (f32 compute + f32 scores) at module-consistent shapes.
    _run_case(k1, B=2, S=8, H=32, NH=4,
              compute_dtype=jnp.float32, out_dtype=jnp.float32,
              trim_padding=True, rtol=1e-4, atol=1e-4)
    # Default fast path: bf16 MXU operands + bf16 scores, padding + trim slice.
    _run_case(k2, B=2, S=20, H=64, NH=8,
              compute_dtype=jnp.bfloat16, out_dtype=jnp.bfloat16,
              trim_padding=True, rtol=5e-2, atol=5e-2)
    # B=1 megacore path: head-group grid axis + untrimmed (padded) bf16 output.
    _run_case(k3, B=1, S=20, H=256, NH=2,
              compute_dtype=jnp.bfloat16, out_dtype=jnp.bfloat16,
              trim_padding=False, rtol=5e-2, atol=5e-2)
    print("KERNEL_OK")
</pallas_src>

<mosaic_0001>
module attributes {stable_mosaic.version = 11 : i64} {
  func.func @_mhsa_kernel(%arg0: i32, %arg1: i32, %arg2: i32, %arg3: memref<1x8x32xf32, #tpu.memory_space<vmem>>, %arg4: memref<32x32xf32, #tpu.memory_space<vmem>>, %arg5: memref<1x32xf32, #tpu.memory_space<vmem>>, %arg6: memref<1x1x1x8xf32, #tpu.memory_space<vmem>>, %arg7: memref<1x4x8x8xf32, #tpu.memory_space<vmem>>, %arg8: memref<4x8x8xf32, #tpu.memory_space<vmem>>) attributes {dimension_semantics = [#tpu.dimension_semantics<parallel>, #tpu.dimension_semantics<parallel>, #tpu.dimension_semantics<arbitrary>], iteration_bounds = array<i64: 2, 1, 1>, scalar_prefetch = 0 : i64, scratch_operands = 1 : i64, tpu.core_type = #tpu.core_type<tc>, window_params = [{transform_indices = @transform_0, window_bounds = array<i64: 1, 8, 32>}, {transform_indices = @transform_1, window_bounds = array<i64: 32, 32>}, {transform_indices = @transform_2, window_bounds = array<i64: 1, 32>}, {transform_indices = @transform_3, window_bounds = array<i64: 1, 1, 1, 8>}, {transform_indices = @transform_4, window_bounds = array<i64: 1, 4, 8, 8>}]} {
    %c0_i32 = arith.constant 0 : i32
    %0 = arith.cmpi eq, %arg2, %c0_i32 : i32
    %1 = arith.extui %0 : i1 to i32
    %c0_i32_0 = arith.constant 0 : i32
    %2 = arith.cmpi ne, %1, %c0_i32_0 : i32
    scf.if %2 {
      %c0_45 = arith.constant 0 : index
      %c0_46 = arith.constant 0 : index
      %c0_47 = arith.constant 0 : index
      %55 = vector.load %arg3[%c0_45, %c0_46, %c0_47] : memref<1x8x32xf32, #tpu.memory_space<vmem>>, vector<1x8x32xf32>
      %56 = vector.shape_cast %55 : vector<1x8x32xf32> to vector<8x32xf32>
      %c0_48 = arith.constant 0 : index
      %c0_49 = arith.constant 0 : index
      %57 = vector.load %arg4[%c0_48, %c0_49] : memref<32x32xf32, #tpu.memory_space<vmem>>, vector<32x8xf32>
      %cst_50 = arith.constant dense<0.000000e+00> : vector<8x8xf32>
      %58 = tpu.matmul %56, %57, %cst_50 {dimension_numbers = #tpu.dot_dimension_numbers<[1], [0], [0], [1], [0, 0, 1, 1], [], []>} : vector<8x32xf32>, vector<32x8xf32>, vector<8x8xf32> -> vector<8x8xf32>
      %c0_51 = arith.constant 0 : index
      %c0_52 = arith.constant 0 : index
      %59 = vector.load %arg5[%c0_51, %c0_52] : memref<1x32xf32, #tpu.memory_space<vmem>>, vector<1x8xf32>
      %60 = vector.broadcast %59 : vector<1x8xf32> to vector<8x8xf32>
      %61 = arith.addf %58, %60 : vector<8x8xf32>
      %c0_53 = arith.constant 0 : index
      %c0_54 = arith.constant 0 : index
      %c0_55 = arith.constant 0 : index
      %62 = vector.load %arg8[%c0_53, %c0_54, %c0_55] : memref<4x8x8xf32, #tpu.memory_space<vmem>>, vector<1x8x8xf32>
      %63 = vector.shape_cast %62 : vector<1x8x8xf32> to vector<8x8xf32>
      %64 = vector.shape_cast %61 : vector<8x8xf32> to vector<1x8x8xf32>
      tpu.vector_store %arg8[%c0_53, %c0_54, %c0_55], %64 {strides = array<i32>} : memref<4x8x8xf32, #tpu.memory_space<vmem>>, vector<1x8x8xf32>,
      %c0_56 = arith.constant 0 : index
      %c8 = arith.constant 8 : index
      %65 = vector.load %arg4[%c0_56, %c8] : memref<32x32xf32, #tpu.memory_space<vmem>>, vector<32x8xf32>
      %cst_57 = arith.constant dense<0.000000e+00> : vector<8x8xf32>
      %66 = tpu.matmul %56, %65, %cst_57 {dimension_numbers = #tpu.dot_dimension_numbers<[1], [0], [0], [1], [0, 0, 1, 1], [], []>} : vector<8x32xf32>, vector<32x8xf32>, vector<8x8xf32> -> vector<8x8xf32>
      %c0_58 = arith.constant 0 : index
      %c8_59 = arith.constant 8 : index
      %67 = vector.load %arg5[%c0_58, %c8_59] : memref<1x32xf32, #tpu.memory_space<vmem>>, vector<1x8xf32>
      %68 = vector.broadcast %67 : vector<1x8xf32> to vector<8x8xf32>
      %69 = arith.addf %66, %68 : vector<8x8xf32>
      %c1_60 = arith.constant 1 : index
      %c0_61 = arith.constant 0 : index
      %c0_62 = arith.constant 0 : index
      %70 = vector.load %arg8[%c1_60, %c0_61, %c0_62] : memref<4x8x8xf32, #tpu.memory_space<vmem>>, vector<1x8x8xf32>
      %71 = vector.shape_cast %70 : vector<1x8x8xf32> to vector<8x8xf32>
      %72 = vector.shape_cast %69 : vector<8x8xf32> to vector<1x8x8xf32>
      tpu.vector_store %arg8[%c1_60, %c0_61, %c0_62], %72 {strides = array<i32>} : memref<4x8x8xf32, #tpu.memory_space<vmem>>, vector<1x8x8xf32>,
      %c0_63 = arith.constant 0 : index
      %c16 = arith.constant 16 : index
      %73 = vector.load %arg4[%c0_63, %c16] : memref<32x32xf32, #tpu.memory_space<vmem>>, vector<32x8xf32>
      %cst_64 = arith.constant dense<0.000000e+00> : vector<8x8xf32>
      %74 = tpu.matmul %56, %73, %cst_64 {dimension_numbers = #tpu.dot_dimension_numbers<[1], [0], [0], [1], [0, 0, 1, 1], [], []>} : vector<8x32xf32>, vector<32x8xf32>, vector<8x8xf32> -> vector<8x8xf32>
      %c0_65 = arith.constant 0 : index
      %c16_66 = arith.constant 16 : index
      %75 = vector.load %arg5[%c0_65, %c16_66] : memref<1x32xf32, #tpu.memory_space<vmem>>, vector<1x8xf32>
      %76 = vector.broadcast %75 : vector<1x8xf32> to vector<8x8xf32>
      %77 = arith.addf %74, %76 : vector<8x8xf32>
      %c2_67 = arith.constant 2 : index
      %c0_68 = arith.constant 0 : index
      %c0_69 = arith.constant 0 : index
      %78 = vector.load %arg8[%c2_67, %c0_68, %c0_69] : memref<4x8x8xf32, #tpu.memory_space<vmem>>, vector<1x8x8xf32>
      %79 = vector.shape_cast %78 : vector<1x8x8xf32> to vector<8x8xf32>
      %80 = vector.shape_cast %77 : vector<8x8xf32> to vector<1x8x8xf32>
      tpu.vector_store %arg8[%c2_67, %c0_68, %c0_69], %80 {strides = array<i32>} : memref<4x8x8xf32, #tpu.memory_space<vmem>>, vector<1x8x8xf32>,
      %c0_70 = arith.constant 0 : index
      %c24 = arith.constant 24 : index
      %81 = vector.load %arg4[%c0_70, %c24] : memref<32x32xf32, #tpu.memory_space<vmem>>, vector<32x8xf32>
      %cst_71 = arith.constant dense<0.000000e+00> : vector<8x8xf32>
      %82 = tpu.matmul %56, %81, %cst_71 {dimension_numbers = #tpu.dot_dimension_numbers<[1], [0], [0], [1], [0, 0, 1, 1], [], []>} : vector<8x32xf32>, vector<32x8xf32>, vector<8x8xf32> -> vector<8x8xf32>
      %c0_72 = arith.constant 0 : index
      %c24_73 = arith.constant 24 : index
      %83 = vector.load %arg5[%c0_72, %c24_73] : memref<1x32xf32, #tpu.memory_space<vmem>>, vector<1x8xf32>
      %84 = vector.broadcast %83 : vector<1x8xf32> to vector<8x8xf32>
      %85 = arith.addf %82, %84 : vector<8x8xf32>
      %c3_74 = arith.constant 3 : index
      %c0_75 = arith.constant 0 : index
      %c0_76 = arith.constant 0 : index
      %86 = vector.load %arg8[%c3_74, %c0_75, %c0_76] : memref<4x8x8xf32, #tpu.memory_space<vmem>>, vector<1x8x8xf32>
      %87 = vector.shape_cast %86 : vector<1x8x8xf32> to vector<8x8xf32>
      %88 = vector.shape_cast %85 : vector<8x8xf32> to vector<1x8x8xf32>
      tpu.vector_store %arg8[%c3_74, %c0_75, %c0_76], %88 {strides = array<i32>} : memref<4x8x8xf32, #tpu.memory_space<vmem>>, vector<1x8x8xf32>,
    } else {
    }
    %c0 = arith.constant 0 : index
    %c0_1 = arith.constant 0 : index
    %c0_2 = arith.constant 0 : index
    %c0_3 = arith.constant 0 : index
    %3 = vector.load %arg6[%c0, %c0_1, %c0_2, %c0_3] : memref<1x1x1x8xf32, #tpu.memory_space<vmem>>, vector<1x1x1x8xf32>
    %4 = vector.shape_cast %3 : vector<1x1x1x8xf32> to vector<1x8xf32>
    %c8_i32 = arith.constant 8 : i32
    %5 = arith.muli %arg2, %c8_i32 : i32
    %6 = tpu.assume_multiple %5, 8 : i32
    %c0_4 = arith.constant 0 : index
    %c0_5 = arith.constant 0 : index
    %c0_6 = arith.constant 0 : index
    %7 = vector.load %arg8[%c0_4, %c0_5, %c0_6] : memref<4x8x8xf32, #tpu.memory_space<vmem>>, vector<1x8x8xf32>
    %8 = vector.shape_cast %7 : vector<1x8x8xf32> to vector<8x8xf32>
    %c0_i32_7 = arith.constant 0 : i32
    %c0_i32_8 = arith.constant 0 : i32
    %c0_i32_9 = arith.constant 0 : i32
    %9 = tpu.memref_slice %arg8[%c0_i32_7, %c0_i32_8, %c0_i32_9] : memref<4x8x8xf32, #tpu.memory_space<vmem>> -> memref<1x8x8xf32, #tpu.memory_space<vmem>>
    %10 = tpu.memref_squeeze %9 : memref<1x8x8xf32, #tpu.memory_space<vmem>> -> memref<8x8xf32, #tpu.memory_space<vmem>>
    %11 = arith.index_cast %6 : i32 to index
    %c0_10 = arith.constant 0 : index
    %12 = vector.load %10[%11, %c0_10] : memref<8x8xf32, #tpu.memory_space<vmem>>, vector<8x8xf32>
    %cst = arith.constant dense<0.000000e+00> : vector<8x8xf32>
    %13 = tpu.matmul %12, %8, %cst {dimension_numbers = #tpu.dot_dimension_numbers<[1], [1], [0], [0], [0, 0, 1, 0], [], []>} : vector<8x8xf32>, vector<8x8xf32>, vector<8x8xf32> -> vector<8x8xf32>
    %14 = vector.broadcast %4 : vector<1x8xf32> to vector<8x8xf32>
    %15 = arith.addf %13, %14 : vector<8x8xf32>
    %c0_11 = arith.constant 0 : index
    %c0_12 = arith.constant 0 : index
    %c0_13 = arith.constant 0 : index
    %c0_14 = arith.constant 0 : index
    %16 = vector.load %arg7[%c0_11, %c0_12, %c0_13, %c0_14] : memref<1x4x8x8xf32, #tpu.memory_space<vmem>>, vector<1x1x8x8xf32>
    %17 = vector.shape_cast %16 : vector<1x1x8x8xf32> to vector<8x8xf32>
    %18 = vector.shape_cast %15 : vector<8x8xf32> to vector<1x1x8x8xf32>
    tpu.vector_store %arg7[%c0_11, %c0_12, %c0_13, %c0_14], %18 {strides = array<i32>} : memref<1x4x8x8xf32, #tpu.memory_space<vmem>>, vector<1x1x8x8xf32>,
    %c1 = arith.constant 1 : index
    %c0_15 = arith.constant 0 : index
    %c0_16 = arith.constant 0 : index
    %19 = vector.load %arg8[%c1, %c0_15, %c0_16] : memref<4x8x8xf32, #tpu.memory_space<vmem>>, vector<1x8x8xf32>
    %20 = vector.shape_cast %19 : vector<1x8x8xf32> to vector<8x8xf32>
    %c1_i32 = arith.constant 1 : i32
    %c0_i32_17 = arith.constant 0 : i32
    %c0_i32_18 = arith.constant 0 : i32
    %21 = tpu.memref_slice %arg8[%c1_i32, %c0_i32_17, %c0_i32_18] : memref<4x8x8xf32, #tpu.memory_space<vmem>> -> memref<1x8x8xf32, #tpu.memory_space<vmem>>
    %22 = tpu.memref_squeeze %21 : memref<1x8x8xf32, #tpu.memory_space<vmem>> -> memref<8x8xf32, #tpu.memory_space<vmem>>
    %23 = arith.index_cast %6 : i32 to index
    %c0_19 = arith.constant 0 : index
    %24 = vector.load %22[%23, %c0_19] : memref<8x8xf32, #tpu.memory_space<vmem>>, vector<8x8xf32>
    %cst_20 = arith.constant dense<0.000000e+00> : vector<8x8xf32>
    %25 = tpu.matmul %24, %20, %cst_20 {dimension_numbers = #tpu.dot_dimension_numbers<[1], [1], [0], [0], [0, 0, 1, 0], [], []>} : vector<8x8xf32>, vector<8x8xf32>, vector<8x8xf32> -> vector<8x8xf32>
    %26 = vector.broadcast %4 : vector<1x8xf32> to vector<8x8xf32>
    %27 = arith.addf %25, %26 : vector<8x8xf32>
    %c0_21 = arith.constant 0 : index
    %c1_22 = arith.constant 1 : index
    %c0_23 = arith.constant 0 : index
    %c0_24 = arith.constant 0 : index
    %28 = vector.load %arg7[%c0_21, %c1_22, %c0_23, %c0_24] : memref<1x4x8x8xf32, #tpu.memory_space<vmem>>, vector<1x1x8x8xf32>
    %29 = vector.shape_cast %28 : vector<1x1x8x8xf32> to vector<8x8xf32>
    %30 = vector.shape_cast %27 : vector<8x8xf32> to vector<1x1x8x8xf32>
    tpu.vector_store %arg7[%c0_21, %c1_22, %c0_23, %c0_24], %30 {strides = array<i32>} : memref<1x4x8x8xf32, #tpu.memory_space<vmem>>, vector<1x1x8x8xf32>,
    %c2 = arith.constant 2 : index
    %c0_25 = arith.constant 0 : index
    %c0_26 = arith.constant 0 : index
    %31 = vector.load %arg8[%c2, %c0_25, %c0_26] : memref<4x8x8xf32, #tpu.memory_space<vmem>>, vector<1x8x8xf32>
    %32 = vector.shape_cast %31 : vector<1x8x8xf32> to vector<8x8xf32>
    %c2_i32 = arith.constant 2 : i32
    %c0_i32_27 = arith.constant 0 : i32
    %c0_i32_28 = arith.constant 0 : i32
    %33 = tpu.memref_slice %arg8[%c2_i32, %c0_i32_27, %c0_i32_28] : memref<4x8x8xf32, #tpu.memory_space<vmem>> -> memref<1x8x8xf32, #tpu.memory_space<vmem>>
    %34 = tpu.memref_squeeze %33 : memref<1x8x8xf32, #tpu.memory_space<vmem>> -> memref<8x8xf32, #tpu.memory_space<vmem>>
    %35 = arith.index_cast %6 : i32 to index
    %c0_29 = arith.constant 0 : index
    %36 = vector.load %34[%35, %c0_29] : memref<8x8xf32, #tpu.memory_space<vmem>>, vector<8x8xf32>
    %cst_30 = arith.constant dense<0.000000e+00> : vector<8x8xf32>
    %37 = tpu.matmul %36, %32, %cst_30 {dimension_numbers = #tpu.dot_dimension_numbers<[1], [1], [0], [0], [0, 0, 1, 0], [], []>} : vector<8x8xf32>, vector<8x8xf32>, vector<8x8xf32> -> vector<8x8xf32>
    %38 = vector.broadcast %4 : vector<1x8xf32> to vector<8x8xf32>
    %39 = arith.addf %37, %38 : vector<8x8xf32>
    %c0_31 = arith.constant 0 : index
    %c2_32 = arith.constant 2 : index
    %c0_33 = arith.constant 0 : index
    %c0_34 = arith.constant 0 : index
    %40 = vector.load %arg7[%c0_31, %c2_32, %c0_33, %c0_34] : memref<1x4x8x8xf32, #tpu.memory_space<vmem>>, vector<1x1x8x8xf32>
    %41 = vector.shape_cast %40 : vector<1x1x8x8xf32> to vector<8x8xf32>
    %42 = vector.shape_cast %39 : vector<8x8xf32> to vector<1x1x8x8xf32>
    tpu.vector_store %arg7[%c0_31, %c2_32, %c0_33, %c0_34], %42 {strides = array<i32>} : memref<1x4x8x8xf32, #tpu.memory_space<vmem>>, vector<1x1x8x8xf32>,
    %c3 = arith.constant 3 : index
    %c0_35 = arith.constant 0 : index
    %c0_36 = arith.constant 0 : index
    %43 = vector.load %arg8[%c3, %c0_35, %c0_36] : memref<4x8x8xf32, #tpu.memory_space<vmem>>, vector<1x8x8xf32>
    %44 = vector.shape_cast %43 : vector<1x8x8xf32> to vector<8x8xf32>
    %c3_i32 = arith.constant 3 : i32
    %c0_i32_37 = arith.constant 0 : i32
    %c0_i32_38 = arith.constant 0 : i32
    %45 = tpu.memref_slice %arg8[%c3_i32, %c0_i32_37, %c0_i32_38] : memref<4x8x8xf32, #tpu.memory_space<vmem>> -> memref<1x8x8xf32, #tpu.memory_space<vmem>>
    %46 = tpu.memref_squeeze %45 : memref<1x8x8xf32, #tpu.memory_space<vmem>> -> memref<8x8xf32, #tpu.memory_space<vmem>>
    %47 = arith.index_cast %6 : i32 to index
    %c0_39 = arith.constant 0 : index
    %48 = vector.load %46[%47, %c0_39] : memref<8x8xf32, #tpu.memory_space<vmem>>, vector<8x8xf32>
    %cst_40 = arith.constant dense<0.000000e+00> : vector<8x8xf32>
    %49 = tpu.matmul %48, %44, %cst_40 {dimension_numbers = #tpu.dot_dimension_numbers<[1], [1], [0], [0], [0, 0, 1, 0], [], []>} : vector<8x8xf32>, vector<8x8xf32>, vector<8x8xf32> -> vector<8x8xf32>
    %50 = vector.broadcast %4 : vector<1x8xf32> to vector<8x8xf32>
    %51 = arith.addf %49, %50 : vector<8x8xf32>
    %c0_41 = arith.constant 0 : index
    %c3_42 = arith.constant 3 : index
    %c0_43 = arith.constant 0 : index
    %c0_44 = arith.constant 0 : index
    %52 = vector.load %arg7[%c0_41, %c3_42, %c0_43, %c0_44] : memref<1x4x8x8xf32, #tpu.memory_space<vmem>>, vector<1x1x8x8xf32>
    %53 = vector.shape_cast %52 : vector<1x1x8x8xf32> to vector<8x8xf32>
    %54 = vector.shape_cast %51 : vector<8x8xf32> to vector<1x1x8x8xf32>
    tpu.vector_store %arg7[%c0_41, %c3_42, %c0_43, %c0_44], %54 {strides = array<i32>} : memref<1x4x8x8xf32, #tpu.memory_space<vmem>>, vector<1x1x8x8xf32>,
    return
  }
  func.func @transform_0(%arg0: i32, %arg1: i32, %arg2: i32) -> (i32, i32, i32) {
    %c0_i32 = arith.constant 0 : i32
    %c0_i32_0 = arith.constant 0 : i32
    %c0_i32_1 = arith.constant 0 : i32
    return %arg0, %c0_i32, %c0_i32_0 : i32, i32, i32
  }
  func.func @transform_1(%arg0: i32, %arg1: i32, %arg2: i32) -> (i32, i32) {
    %c0_i32 = arith.constant 0 : i32
    %c0_i32_0 = arith.constant 0 : i32
    return %c0_i32, %arg1 : i32, i32
  }
  func.func @transform_2(%arg0: i32, %arg1: i32, %arg2: i32) -> (i32, i32) {
    %c0_i32 = arith.constant 0 : i32
    %c0_i32_0 = arith.constant 0 : i32
    return %c0_i32, %arg1 : i32, i32
  }
  func.func @transform_3(%arg0: i32, %arg1: i32, %arg2: i32) -> (i32, i32, i32, i32) {
    %c0_i32 = arith.constant 0 : i32
    %c0_i32_0 = arith.constant 0 : i32
    %c0_i32_1 = arith.constant 0 : i32
    %c0_i32_2 = arith.constant 0 : i32
    return %arg0, %c0_i32, %c0_i32_0, %c0_i32_1 : i32, i32, i32, i32
  }
  func.func @transform_4(%arg0: i32, %arg1: i32, %arg2: i32) -> (i32, i32, i32, i32) {
    %c0_i32 = arith.constant 0 : i32
    %c0_i32_0 = arith.constant 0 : i32
    return %arg0, %arg1, %arg2, %c0_i32 : i32, i32, i32, i32
  }
}

</mosaic_0001>

<bundles_post_ra>
// kernel: tpu_custom_call.1
= control target key start
LH: loop header
LB: loop body
LE: loop exit
PB: predicated region body
PF: predicated region fallthrough
CT: control target
= control target key end

     0   :  { %9 = vsyncpa [#allocation4], 0  ;;  %s1313_s0 = inlined_call_operand.hbm [shape: f32[2,8,32], index: 0, kind: input, shape index: {}]   ;;  %s1314_s1 = inlined_call_operand.hbm [shape: f32[32,32], index: 1, kind: input, shape index: {}]   ;;  %s1315_s2 = inlined_call_operand.hbm [shape: f32[1,32], index: 2, kind: input, shape index: {}]   ;;  %s1316_s3 = inlined_call_operand.vmem [shape: f32[2,1,1,8], index: 3, kind: input, shape index: {}]   ;;  %s1317_s4 = inlined_call_operand.hbm [shape: f32[2,4,8,8], index: 4, kind: output, shape index: {}]  }
   0x1   :  { %11 = vsyncpa [#allocation4 + $0x1], 0 }
   0x2   :  { %12 = vsyncpa [#allocation7], 0 }
   0x3   :  { %13 = vsyncpa [#allocation5], 0 }
   0x4   :  { %15 = vsyncpa [#allocation5 + $0x1], 0  ;;  %s1135_s15 = smov 0   ;;  %s1137_s16 = smov 0  }
   0x5   :  { %s1139_s17 = smov 0   ;;  %s1141_s18 = smov 0  }
   0x6   :  { %s1143_s19 = smov 0   ;;  %s1145_s20 = smov 0  }
   0x7 LB: > { %s761_s21 = sadd.s32 4294967295, %s1099_s20   ;;  %p763_p0 = scmp.ge.s32.totalorder %s1099_s20, 1  ;;  %s1099_s20 = sphi %s1145_s20, %s21_s20   ;;  %s1095_s19 = sphi %s1143_s19, %s1327_s19   ;;  %s1091_s18 = sphi %s1141_s18, %s1326_s18   ;;  %s1087_s17 = sphi %s1139_s17, %s1325_s17   ;;  %s1083_s16 = sphi %s1137_s16, %s1324_s16   ;;  %s1079_s15 = sphi %s1135_s15, %s1323_s15  }
   0x8   : > { %p1169_p1 = scmp.eq.s32.totalorder %s761_s21, 0  ;;  %p179_p2 = scmp.lt.s32.totalorder %s1099_s20, 3 }
   0x9   : > { %s192_s25 = sshll.u32 %s1314_s1, 4  ;;  %s1101_s27 = smov [#allocation6]   ;;  %s193_s25 = int_to_ptr.hbm [resolvable:$true] %s192_s25 }
   0xa   : > { %p1177_p3 = pnand %p763_p0, %p179_p2  ;;  %s194_s28 = sshll.u32 %s1101_s27, 4  ;;  %s195_s28 = int_to_ptr.vmem [resolvable:$true] %s194_s28 }
   0xb   : > { %p766_p6 = scmp.ge.s32.totalorder %s1099_s20, 2  ;;  %s208_s5 = sshll.u32 %s1315_s2, 4  ;;  %s209_s5 = int_to_ptr.hbm [resolvable:$true] %s208_s5 }
   0xc   : > { %p810_p4 = pneg %p1177_p3  ;;  %s1102_s6 = smov 128  }
   0xd   : > { %s1103_s7 = smov 8   ;;  %s1104_s8 = smov [#allocation8]  }
   0xe   : > { %p811_p5 = pnand %p810_p4, %p1169_p1  ;;  %s210_s9 = sshll.u32 %s1104_s8, 4  ;;  %s211_s9 = int_to_ptr.vmem [resolvable:$true] %s210_s9 }
   0xf   : > { %s40_s10 = sadd.s32 1, %s1095_s19  ;;  %s762_s11 = sadd.s32 4294967294, %s1099_s20  }
  0x10   : > { %813 = dma.hbm_to_vmem [thread:$0]  (!%p811_p5), %s193_s25, 512, %s195_s28, [#allocation7], %s1102_s6, %s1102_s6, %s1103_s7  }
  0x11   : > { %816 = dma.hbm_to_vmem [thread:$0]  (!%p811_p5), %s209_s5, 16, %s211_s9, [#allocation7]  }
  0x12   : > { %p42_p7 = scmp.ge.s32.totalorder %s40_s10, 2  ;;  %s47_s12 = sadd.s32 1, %s1087_s17 }
  0x13   : > { %p54_p8 = scmp.ne.s32.totalorder %s1087_s17, %s1083_s16  ;;  %p55_p9 = scmp.eq.s32.totalorder %s1099_s20, 0 }
  0x14   : > { %s1329_s10 = smov (%p42_p7, %s40_s10), 0  ;;  %p60_p10 = scmp.ne.s32.totalorder %s1083_s16, %s1079_s15 }
  0x15   : > { %s44_s13 = ssub.s32 %s1095_s19, %s1329_s10  ;;  %p166_p11 = scmp.eq.s32.totalorder %s761_s21, 1 }
  0x16   : > { %p45_p12 = scmp.eq.s32.totalorder %s44_s13, 0  ;;  %p1205_p13 = por %p1169_p1, %p60_p10 }
  0x17   : > { %p1209_p0 = por %p166_p11, %p54_p8  ;;  %p172_p2 = scmp.eq.s32.totalorder %s762_s11, 1 }
  0x18   : > { %s1214_s24 = scalar_select %p45_p12, %s1087_s17, %s47_s12  }
  0x19   : > { %p56_p4 = por %p55_p9, %p54_p8  ;;  %p1216_p5 = por %p172_p2, %p60_p10 }
  0x1a   : > { %s221_s27 = sand.u32 1, %s1087_s17   ;;  %s768_s21 = sshll.u32 %s1095_s19, 3 }
  0x1b   : > { %p827_p7 = scmp.lt.s32.totalorder %s1099_s20, 2  ;;  %s767_s28 = sshll.u32 %s221_s27, 3 }
  0x1c   : > { %s229_s5 = scalar_lea.hbm %s1313_s0, %s768_s21  ;;  %s225_s7 = scalar_lea.vmem [#allocation3], %s767_s28 }
  0x1d   : > { %s231_s6 = sshll.u32 %s229_s5, 4  ;;  %s233_s8 = sshll.u32 %s225_s7, 4  ;;  %s232_s6 = int_to_ptr.hbm [resolvable:$true] %s231_s6  ;;  %s234_s8 = int_to_ptr.vmem [resolvable:$true] %s233_s8 }
  0x1e   : > { %p818_p11 = pnand %p827_p7, %p56_p4  ;;  %s222_s9 = scalar_lea.sflag [#allocation4], %s221_s27 }
  0x1f   : > { %248 = sbr.rel (%p1177_p3) target bundleno = 457 (0x1c9), region = 36  ;;  %s1229_s11 = sand.u32 (!%p1177_p3), 1, %s1083_s16  }
  0x20   : > { %820 = dma.hbm_to_vmem [thread:$0]  (!%p818_p11), %s232_s6, 128, %s234_s8, %s222_s9  }
  0x21   : > { %s770_s12 = sshll.u32 (!%p1177_p3), %s1229_s11, 3  ;;  %s251_s13 = scalar_lea.sflag (!%p1177_p3), [#allocation4], %s1229_s11 }
  0x22   : > { %s254_s21 = scalar_lea.vmem (!%p1177_p3), [#allocation3], %s770_s12 }
  0x24   : > { %1066 = dma.done.wait (%p1205_p13), %s251_s13, 128  }
  0x25   : > { %1068 = vsyncadd (%p1205_p13), %s251_s13, 4294967168 }
  0x26   : > { %1070 = dma.done.wait (%p1169_p1), [#allocation7], 528  }
  0x27   : > { %1072 = vsyncadd (%p1169_p1), [#allocation7], 4294966768  ;;  %v386_v0 = vld [vmem:[#allocation6 + $0x10] sm:$0xff]  ;;  %v387_v1 = vld [vmem:[#allocation6 + $0x18] sm:$0xff]  ;;  %s1105_s26 = smov 112   ;;  %s1106_s27 = smov 120  }
  0x28   : > { %v384_v2 = vld [vmem:[#allocation6] sm:$0xff]  ;;  %v888_v3 = vpack.i.bf16 %v386_v0, %v387_v1  ;;  %v385_v4 = vld [vmem:[#allocation6 + $0x8] sm:$0xff]  ;;  %326 = vmatpush.msra.mxu0 %v387_v1  ;;  %s1107_s14 = smov 104   ;;  %v301_v7 = vld [vmem:[%s254_s21] sm:$0xff]  ;;  %vm310_vm0 = vcmask 261120   ;;  %p293_p1 = scmp.lt.s32.totalorder %s1091_s18, 1 }
  0x29   : > { %v898_v5 = vpack.i.bf16 %v384_v2, %v385_v4  ;;  %v918_v10 = vld [vmem:[#allocation8] ss:$0 sm:$0xff]  ;;  %vm334_vm1 = vcmask 64512   ;;  %s773_s5 = sshll.u32 %s1229_s11, 5  ;;  %s797_s9 = sshll.u32 %s1091_s18, 5 }
  0x2a   : > { %889 = vrot.lane.b32.xlu0 %v888_v3, %s1105_s26  ;;  %909 = vrot.lane.b32.xlu2 %v888_v3, %s1106_s27  ;;  %v919_v11 = vld [vmem:[#allocation8] ss:$0 sm:$0xff]  ;;  %s1247_s22 = scalar_select %p293_p1, %s1091_s18, 1 }
  0x2b   : > { %899 = vrot.lane.b32.xlu1 %v898_v5, %s1105_s26  ;;  %327 = vmatpush.msra.mxu0 %v386_v0  ;;  %v920_v12 = vld [vmem:[#allocation8] ss:$0 sm:$0xff]  ;;  %s292_s8 = scalar_lea.vmem [#allocation9], %s773_s5  ;;  %s627_s21 = scalar_lea.hbm %s1317_s4, %s797_s9 }
  0x2c   : > { %s295_s30 = scalar_lea.vmem %s1316_s3, %s1247_s22  ;;  %v921_v28 = vld [vmem:[#allocation8] ss:$0 sm:$0xff] }
  0x2d   : > { %328 = vmatpush.msra.mxu0 %v385_v4  ;;  %v922_v44 = vld [vmem:[%s295_s30] ss:$0 sm:$0xff]  ;;  %s1033_s30 = scalar_lea.hbm %s1317_s4, 64 }
  0x2f   : > { %329 = vmatpush.msra.mxu0 %v384_v2 }
  0x30   : > { %774 = vmatmul.msk.f32.vlgmr.msra.gmra.mxu0 %vm310_vm0, %v301_v7 }
  0x32   : > { %894 = vrot.lane.b32.xlu0 %v888_v3, %s1107_s14  ;;  %914 = vrot.lane.b32.xlu2 %v898_v5, %s1106_s27 }
  0x33   : > { %904 = vrot.lane.b32.xlu1 %v898_v5, %s1107_s14 }
  0x3a   : > { %407 = vrot.lane.b32.xlu0 %v918_v10, %s1105_s26  ;;  %359 = vrot.lane.b32.xlu2 %v920_v12, %s1106_s27  ;;  %s628_s26 = sshll.u32 %s292_s8, 4  ;;  %s630_s27 = sshll.u32 %s627_s21, 4  ;;  %s629_s26 = int_to_ptr.vmem [resolvable:$true] %s628_s26  ;;  %s631_s27 = int_to_ptr.hbm [resolvable:$true] %s630_s27 }
  0x3b   : > { %455 = vrot.lane.b32.xlu1 %v919_v11, %s1107_s14  ;;  %s613_s14 = scalar_lea.sflag [#allocation5], %s1229_s11  ;;  %s1027_s22 = sshra.s32 %s631_s27, 4  ;;  %s1028_s22 = int_to_ptr.hbm [resolvable:$true] %s1027_s22 }
  0x3c   : > { %s1029_s18 = scalar_lea.hbm %s1028_s22, 32  ;;  %p1034_p10 = scmp.lt.s32.totalorder %s1028_s22, %s1317_s4 }
  0x3d   : > { %p1030_p3 = scmp.ne.s32.totalorder %s1028_s22, %s1029_s18  ;;  %p1035_p12 = scmp.lt.s32.totalorder %s1033_s30, %s1029_s18 }
  0x3f   : > { %p1031_p8 = pnand %p1030_p3, %p1209_p0  ;;  %p1036_p13 = por %p1035_p12, %p1034_p10 }
  0x41   : > { %p1032_p9 = pneg %p1031_p8 }
  0x43   : > { %p1037_p2 = pnand %p1036_p13, %p1032_p9 }
  0x84   : > { %v910_v6 = vpop.permute.xlu2 %909 }
  0x85   : > { %v911_v8 = vunpack.i.l.bf16 %v910_v6  ;;  %v912_v9 = vunpack.i.h.bf16 %v910_v6 }
  0x87   : > { %374 = vmatpush.msra.mxu1 %v911_v8 }
  0x89   : > { %375 = vmatpush.msra.mxu1 %v912_v9 }
  0x8c   : > { %v915_v13 = vpop.permute.xlu2 %914 }
  0x8d   : > { %v916_v14 = vunpack.i.l.bf16 %v915_v13  ;;  %v917_v15 = vunpack.i.h.bf16 %v915_v13 }
  0x8f   : > { %376 = vmatpush.msra.mxu1 %v916_v14 }
  0x91   : > { %377 = vmatpush.msra.mxu1 %v917_v15 }
  0x92   : > { %775 = vmatmul.msk.f32.vlgmr.msra.gmra.mxu1 %vm310_vm0, %v301_v7 }
  0x94   : > { %v360_v29 = vpop.permute.xlu2 %359 }
  0x9c   : > { %v890_v16 = vpop.permute.xlu0 %889 }
  0x9d   : > { %v891_v17 = vunpack.i.l.bf16 %v890_v16  ;;  %v900_v18 = vpop.permute.xlu1 %899  ;;  %v892_v19 = vunpack.i.h.bf16 %v890_v16 }
  0x9e   : > { %v901_v20 = vunpack.i.l.bf16 %v900_v18  ;;  %v902_v21 = vunpack.i.h.bf16 %v900_v18 }
  0x9f   : > { %422 = vmatpush.msra.mxu2 %v891_v17 }
  0xa1   : > { %423 = vmatpush.msra.mxu2 %v892_v19 }
  0xa3   : > { %424 = vmatpush.msra.mxu2 %v901_v20 }
  0xa4   : > { %v895_v22 = vpop.permute.xlu0 %894 }
  0xa5   : > { %425 = vmatpush.msra.mxu2 %v902_v21  ;;  %v896_v23 = vunpack.i.l.bf16 %v895_v22  ;;  %v905_v24 = vpop.permute.xlu1 %904  ;;  %v897_v25 = vunpack.i.h.bf16 %v895_v22 }
  0xa6   : > { %776 = vmatmul.msk.f32.vlgmr.msra.gmra.mxu2 %vm310_vm0, %v301_v7  ;;  %v906_v26 = vunpack.i.l.bf16 %v905_v24  ;;  %v907_v27 = vunpack.i.h.bf16 %v905_v24 }
  0xa7   : > { %470 = vmatpush.msra.mxu3 %v896_v23 }
  0xa9   : > { %471 = vmatpush.msra.mxu3 %v897_v25 }
  0xab   : > { %472 = vmatpush.msra.mxu3 %v906_v26 }
  0xac   : > { %v408_v36 = vpop.permute.xlu0 %407 }
  0xad   : > { %473 = vmatpush.msra.mxu3 %v907_v27  ;;  %v331_v30 = vpop.f32.mrf.mxu0  ;;  %v456_v39 = vpop.permute.xlu1 %455 }
  0xae   : > { %777 = vmatmul.msk.f32.vlgmr.msra.gmra.mxu3 %vm310_vm0, %v301_v7  ;;  %v332_v31 = vadd.f32 %v921_v28, %v331_v30 }
  0xb0   : > { %335 = vst.msk [vmem:[#allocation2] sm:$0xff] %vm334_vm1, %v332_v31 }
  0xb7   : > { %v482_v34 = vld [vmem:[#allocation2] sm:$0xff] }
  0xb8   : > { %778 = vmatpush.xpose.msk.msrb.mxu0 %vm334_vm1, %v482_v34 }
  0xbb   : > { %779 = vmatmul.msk.f32.vlgmr.msrb.gmra.mxu0 %vm334_vm1, %v482_v34 }
 0x10f   : > { %v379_v32 = vpop.f32.mrf.mxu1 }
 0x110   : > { %v380_v33 = vadd.f32 %v379_v32, %v360_v29 }
 0x112   : > { %383 = vst.msk [vmem:[#allocation2 + $0x8] sm:$0xff] %vm334_vm1, %v380_v33 }
 0x119   : > { %v517_v35 = vld [vmem:[#allocation2 + $0x8] sm:$0xff] }
 0x11a   : > { %781 = vmatpush.xpose.msk.msrb.mxu1 %vm334_vm1, %v517_v35 }
 0x11d   : > { %782 = vmatmul.msk.f32.vlgmr.msrb.gmra.mxu1 %vm334_vm1, %v517_v35 }
 0x129   : > { %v427_v37 = vpop.f32.mrf.mxu2 }
 0x12a   : > { %v428_v38 = vadd.f32 %v427_v37, %v408_v36 }
 0x12c   : > { %431 = vst.msk [vmem:[#allocation2 + $0x10] sm:$0xff] %vm334_vm1, %v428_v38 }
 0x131   : > { %v475_v40 = vpop.f32.mrf.mxu3 }
 0x132   : > { %v476_v41 = vadd.f32 %v475_v40, %v456_v39 }
 0x133   : > { %v549_v42 = vld [vmem:[#allocation2 + $0x10] sm:$0xff] }
 0x134   : > { %479 = vst.msk [vmem:[#allocation2 + $0x18] sm:$0xff] %vm334_vm1, %v476_v41  ;;  %785 = vmatpush.xpose.msk.msrb.mxu2 %vm334_vm1, %v549_v42 }
 0x137   : > { %786 = vmatmul.msk.f32.vlgmr.msrb.gmra.mxu2 %vm334_vm1, %v549_v42 }
 0x138   : > { %v512_v45 = vpop.f32.mrf.mxu0 }
 0x139   : > { %v513_v46 = vadd.f32 %v922_v44, %v512_v45 }
 0x13b   : > { %v581_v43 = vld [vmem:[#allocation2 + $0x18] sm:$0xff]  ;;  %515 = vst.msk [vmem:[%s292_s8] sm:$0xff] %vm334_vm1, %v513_v46 }
 0x13c   : > { %789 = vmatpush.xpose.msk.msrb.mxu3 %vm334_vm1, %v581_v43 }
 0x13f   : > { %790 = vmatmul.msk.f32.vlgmr.msrb.gmra.mxu3 %vm334_vm1, %v581_v43 }
 0x19a   : > { %v543_v47 = vpop.f32.mrf.mxu1 }
 0x19b   : > { %v544_v48 = vadd.f32 %v922_v44, %v543_v47 }
 0x19d   : > { %783 = vst.msk [vmem:[%s292_s8 + $0x8] sm:$0xff] %vm334_vm1, %v544_v48 }
 0x1ba   : > { %v575_v49 = vpop.f32.mrf.mxu2 }
 0x1bb   : > { %v576_v50 = vadd.f32 %v922_v44, %v575_v49 }
 0x1bd   : > { %787 = vst.msk [vmem:[%s292_s8 + $0x10] sm:$0xff] %vm334_vm1, %v576_v50 }
 0x1c2   : > { %v607_v51 = vpop.f32.mrf.mxu3 }
 0x1c3   : > { %v608_v52 = vadd.f32 %v922_v44, %v607_v51 }
 0x1c5   : > { %791 = vst.msk [vmem:[%s292_s8 + $0x18] sm:$0xff] %vm334_vm1, %v608_v52 }
 0x1c6   : > { %1040 = shalt.err (!%p1037_p2)
}
 0x1c7   : > { %s1108_s11 = smov 128   ;;  %s1109_s7 = smov 8  }
 0x1c8   : > { %808 = dma.vmem_to_hbm [thread:$0]  (%p1209_p0), %s629_s26, 512, %s631_s27, %s613_s14, %s1108_s11, %s1108_s11, %s1109_s7  }
 0x1c9 PF: > { %s645_s8 = sand.u32 1, %s1079_s15   ;;  %p822_p4 = pnand %p766_p6, %p1216_p5 }
 0x1ca   : > { %s646_s9 = scalar_lea.sflag [#allocation5], %s645_s8 }
 0x1cb   : > { %p823_p7 = pneg %p822_p4 }
 0x1cd   : > { %1074 = dma.done.wait (%p823_p7), %s646_s9, 512  }
 0x1ce   : > { %1076 = vsyncadd (%p823_p7), %s646_s9, 4294966784  ;;  %s21_s20 = sadd.s32 1, %s1099_s20   ;;  %s1323_s15 = smov %s1083_s16 }
 0x1cf   : > { %p18_p11 = scmp.ge.s32.totalorder %s21_s20, 4   ;;  %s1324_s16 = smov %s1087_s17 }
 0x1d0   : > { %s1325_s17 = smov %s1214_s24  ;;  %s1326_s18 = smov %s1095_s19 }
 0x1d1   : > { %s1327_s19 = smov %s1329_s10  ;;  %20 = sbr.rel (!%p18_p11) target bundleno = 7 (0x7), region = 111 }
 0x1d6   :  { %652 = vsyncpa [#allocation4], 1 }
 0x1d7   :  { %654 = vsyncpa [#allocation4 + $0x1], 1 }
 0x1d8   :  { %655 = vsyncpa [#allocation7], 1 }
 0x1d9   :  { %656 = vsyncpa [#allocation5], 1 }
 0x1da   :  { %658 = vsyncpa [#allocation5 + $0x1], 1 }

</bundles_post_ra>
